<compile_context>
chip_gen: v7x
topology: tpu7x:2x2x1
jax: 0.10.0
libtpu: 0.0.40
codegen_flags: <defaults>
</compile_context>

<pallas_src>
import functools

import jax
import jax.numpy as jnp
from jax.experimental import pallas as pl
from jax.experimental.pallas import tpu as pltpu


# ----------------------------- kernels --------------------------------------


def _proj_rmsnorm_kernel(x_ref, w_ref, nw_ref, o_ref, *, eps):
    # x_ref: (seq, hidden)  w_ref: (hidden, D)  nw_ref: (1, D)  o_ref: (seq, D)
    y = jnp.dot(x_ref[...], w_ref[...], preferred_element_type=jnp.float32)
    var = jnp.mean(y * y, axis=-1, keepdims=True)
    y = y * jax.lax.rsqrt(var + eps)
    o_ref[...] = (nw_ref[...] * y).astype(o_ref.dtype)


def _kv_proj_kernel(x_ref, wk_ref, wv_ref, nw_ref, k_ref, v_ref, *, eps):
    # x_ref: (kv_len, hidden)  wk/wv: (hidden, D)  nw: (1, D)
    x = x_ref[...]
    k = jnp.dot(x, wk_ref[...], preferred_element_type=jnp.float32)
    var = jnp.mean(k * k, axis=-1, keepdims=True)
    k = k * jax.lax.rsqrt(var + eps)
    k_ref[...] = (nw_ref[...] * k).astype(k_ref.dtype)
    v_ref[...] = jnp.dot(
        x, wv_ref[...], preferred_element_type=jnp.float32
    ).astype(v_ref.dtype)


def _sdpa_kernel(q_ref, k_ref, v_ref, o_ref, *, scale):
    # q: (q_len, D)  k, v: (kv_len, D).  Non-causal, no mask, dropout_p = 0.
    s = jnp.einsum(
        "qd,kd->qk", q_ref[...], k_ref[...], preferred_element_type=jnp.float32
    ) * scale
    m = jnp.max(s, axis=-1, keepdims=True)
    p = jnp.exp(s - m)
    p = p * pl.reciprocal(jnp.sum(p, axis=-1, keepdims=True), approx=False)
    o_ref[...] = jnp.dot(
        p.astype(v_ref.dtype), v_ref[...], preferred_element_type=jnp.float32
    ).astype(o_ref.dtype)


def _oproj_kernel(a_ref, w_ref, o_ref, acc_ref):
    # a_ref: (q_len, D) for head h   w_ref: (D, hidden) for head h
    # o_ref: (q_len, hidden) — same block for every h (accumulator pattern)
    h = pl.program_id(1)

    @pl.when(h == 0)
    def _():
        acc_ref[...] = jnp.zeros_like(acc_ref)

    acc_ref[...] += jnp.dot(
        a_ref[...], w_ref[...], preferred_element_type=jnp.float32
    )

    @pl.when(h == pl.num_programs(1) - 1)
    def _():
        o_ref[...] = acc_ref[...].astype(o_ref.dtype)


# ----------------------------- wrapper ---------------------------------------


def mllama_text_cross_attention(
    hidden_states,        # (bs, q_len, hidden)
    cross_states,         # (bs, kv_len, hidden)
    wq_t,                 # (hidden, num_heads * head_dim)    == q_proj.weight.T
    wk_t,                 # (hidden, num_kv_heads * head_dim) == k_proj.weight.T
    wv_t,                 # (hidden, num_kv_heads * head_dim) == v_proj.weight.T
    wo_t,                 # (num_heads * head_dim, hidden)    == o_proj.weight.T
    q_norm_w,             # (head_dim,)
    k_norm_w,             # (head_dim,)
    *,
    num_heads,
    num_kv_heads,
    eps=1e-5,
):
    bs, q_len, hidden = hidden_states.shape
    _, kv_len, _ = cross_states.shape
    head_dim = hidden // num_heads
    groups = num_heads // num_kv_heads
    scale = head_dim ** -0.5          # FusedSDPA default scale (scale=None)
    dtype = hidden_states.dtype

    qn = q_norm_w.reshape(1, head_dim)
    kn = k_norm_w.reshape(1, head_dim)

    parallel2 = pltpu.CompilerParams(
        dimension_semantics=("parallel", "parallel"))

    # ---- Q projection + per-head RMSNorm, layout (bs, H, q_len, D) ----------
    q = pl.pallas_call(
        functools.partial(_proj_rmsnorm_kernel, eps=eps),
        out_shape=jax.ShapeDtypeStruct((bs, num_heads, q_len, head_dim), dtype),
        grid=(bs, num_heads),
        in_specs=[
            pl.BlockSpec((None, q_len, hidden), lambda b, h: (b, 0, 0)),
            pl.BlockSpec((hidden, head_dim), lambda b, h: (0, h)),
            pl.BlockSpec((1, head_dim), lambda b, h: (0, 0)),
        ],
        out_specs=pl.BlockSpec(
            (None, None, q_len, head_dim), lambda b, h: (b, h, 0, 0)),
        compiler_params=parallel2,
    )(hidden_states, wq_t, qn)

    # ---- K (RMSNorm) / V projections, layout (bs, KVH, kv_len, D) -----------
    k, v = pl.pallas_call(
        functools.partial(_kv_proj_kernel, eps=eps),
        out_shape=(
            jax.ShapeDtypeStruct((bs, num_kv_heads, kv_len, head_dim), dtype),
            jax.ShapeDtypeStruct((bs, num_kv_heads, kv_len, head_dim), dtype),
        ),
        grid=(bs, num_kv_heads),
        in_specs=[
            pl.BlockSpec((None, kv_len, hidden), lambda b, h: (b, 0, 0)),
            pl.BlockSpec((hidden, head_dim), lambda b, h: (0, h)),
            pl.BlockSpec((hidden, head_dim), lambda b, h: (0, h)),
            pl.BlockSpec((1, head_dim), lambda b, h: (0, 0)),
        ],
        out_specs=(
            pl.BlockSpec((None, None, kv_len, head_dim),
                         lambda b, h: (b, h, 0, 0)),
            pl.BlockSpec((None, None, kv_len, head_dim),
                         lambda b, h: (b, h, 0, 0)),
        ),
        compiler_params=parallel2,
    )(cross_states, wk_t, wv_t, kn)

    # ---- SDPA per (batch, head); GQA via h // groups in the k/v index_map ---
    attn = pl.pallas_call(
        functools.partial(_sdpa_kernel, scale=scale),
        out_shape=jax.ShapeDtypeStruct((bs, num_heads, q_len, head_dim), dtype),
        grid=(bs, num_heads),
        in_specs=[
            pl.BlockSpec((None, None, q_len, head_dim),
                         lambda b, h: (b, h, 0, 0)),
            pl.BlockSpec((None, None, kv_len, head_dim),
                         lambda b, h: (b, h // groups, 0, 0)),
            pl.BlockSpec((None, None, kv_len, head_dim),
                         lambda b, h: (b, h // groups, 0, 0)),
        ],
        out_specs=pl.BlockSpec(
            (None, None, q_len, head_dim), lambda b, h: (b, h, 0, 0)),
        compiler_params=parallel2,
    )(q, k, v)

    # ---- o_proj as reduction over heads (avoids the transpose/concat) -------
    wo3 = wo_t.reshape(num_heads, head_dim, hidden)
    out = pl.pallas_call(
        _oproj_kernel,
        out_shape=jax.ShapeDtypeStruct((bs, q_len, hidden), dtype),
        grid=(bs, num_heads),
        in_specs=[
            pl.BlockSpec((None, None, q_len, head_dim),
                         lambda b, h: (b, h, 0, 0)),
            pl.BlockSpec((None, head_dim, hidden), lambda b, h: (h, 0, 0)),
        ],
        out_specs=pl.BlockSpec((None, q_len, hidden), lambda b, h: (b, 0, 0)),
        scratch_shapes=[pltpu.VMEM((q_len, hidden), jnp.float32)],
        compiler_params=pltpu.CompilerParams(
            dimension_semantics=("parallel", "arbitrary")),
    )(attn, wo3)

    # matches torch: attn_output.view(-1, num_heads * head_size) -> o_proj
    return out.reshape(bs * q_len, hidden)
    # TODO(synk): tensor-parallel all-reduce of o_proj (TensorParallelRowLinear)
    # and ragged cross_attention_len / indices masking are not modeled here.


# ----------------------------- reference -------------------------------------


def _rmsnorm_ref(x, w, eps):
    xf = x.astype(jnp.float32)
    var = jnp.mean(xf * xf, axis=-1, keepdims=True)
    xf = xf * jax.lax.rsqrt(var + eps)
    return w * xf.astype(x.dtype)


def _reference(hidden_states, cross_states, wq_t, wk_t, wv_t, wo_t,
               q_norm_w, k_norm_w, num_heads, num_kv_heads, eps):
    bs, q_len, hidden = hidden_states.shape
    _, kv_len, _ = cross_states.shape
    d = hidden // num_heads
    g = num_heads // num_kv_heads

    q = (hidden_states @ wq_t).reshape(bs, q_len, num_heads, d)
    q = _rmsnorm_ref(q, q_norm_w, eps)
    k = (cross_states @ wk_t).reshape(bs, kv_len, num_kv_heads, d)
    k = _rmsnorm_ref(k, k_norm_w, eps)
    v = (cross_states @ wv_t).reshape(bs, kv_len, num_kv_heads, d)

    q = q.transpose(0, 2, 1, 3)
    k = jnp.repeat(k.transpose(0, 2, 1, 3), g, axis=1)
    v = jnp.repeat(v.transpose(0, 2, 1, 3), g, axis=1)

    s = jnp.einsum("bhqd,bhkd->bhqk", q, k) * (d ** -0.5)
    p = jax.nn.softmax(s.astype(jnp.float32), axis=-1).astype(q.dtype)
    o = jnp.einsum("bhqk,bhkd->bhqd", p, v)
    o = o.transpose(0, 2, 1, 3).reshape(bs * q_len, num_heads * d)
    return o @ wo_t


# ----------------------------- test harness ----------------------------------


if __name__ == "__main__":
    bs = 2
    q_len = 8
    kv_len = 32
    num_heads = 4
    num_kv_heads = 2
    head_dim = 128
    hidden = num_heads * head_dim  # 512
    eps = 1e-5

    key = jax.random.PRNGKey(0)
    ks = jax.random.split(key, 8)
    sc = hidden ** -0.5

    hidden_states = jax.random.normal(ks[0], (bs, q_len, hidden), jnp.float32)
    cross_states = jax.random.normal(ks[1], (bs, kv_len, hidden), jnp.float32)
    wq_t = jax.random.normal(ks[2], (hidden, num_heads * head_dim), jnp.float32) * sc
    wk_t = jax.random.normal(ks[3], (hidden, num_kv_heads * head_dim), jnp.float32) * sc
    wv_t = jax.random.normal(ks[4], (hidden, num_kv_heads * head_dim), jnp.float32) * sc
    wo_t = jax.random.normal(ks[5], (num_heads * head_dim, hidden), jnp.float32) * sc
    q_norm_w = 1.0 + 0.1 * jax.random.normal(ks[6], (head_dim,), jnp.float32)
    k_norm_w = 1.0 + 0.1 * jax.random.normal(ks[7], (head_dim,), jnp.float32)

    out = mllama_text_cross_attention(
        hidden_states, cross_states, wq_t, wk_t, wv_t, wo_t, q_norm_w, k_norm_w,
        num_heads=num_heads, num_kv_heads=num_kv_heads, eps=eps)
    out = jax.block_until_ready(out)

    ref = _reference(hidden_states, cross_states, wq_t, wk_t, wv_t, wo_t,
                     q_norm_w, k_norm_w, num_heads, num_kv_heads, eps)

    assert out.shape == ref.shape and out.dtype == ref.dtype
    rel_err = jnp.max(jnp.abs(out - ref)) / (jnp.max(jnp.abs(ref)) + 1e-8)
    assert rel_err < 2e-2, f"mismatch vs reference (rel err {rel_err})"

    print("KERNEL_OK")
</pallas_src>

<mosaic_0001>
module attributes {stable_mosaic.version = 11 : i64} {
  func.func @_proj_rmsnorm_kernel(%arg0: i32, %arg1: i32, %arg2: memref<1x8x512xf32, #tpu.memory_space<vmem>>, %arg3: memref<512x128xf32, #tpu.memory_space<vmem>>, %arg4: memref<1x128xf32, #tpu.memory_space<vmem>>, %arg5: memref<1x1x8x128xf32, #tpu.memory_space<vmem>>) attributes {dimension_semantics = [#tpu.dimension_semantics<parallel>, #tpu.dimension_semantics<parallel>], iteration_bounds = array<i64: 2, 4>, scalar_prefetch = 0 : i64, scratch_operands = 0 : i64, tpu.core_type = #tpu.core_type<tc>, window_params = [{transform_indices = @transform_0, window_bounds = array<i64: 1, 8, 512>}, {transform_indices = @transform_1, window_bounds = array<i64: 512, 128>}, {pipeline_mode = #tpu.pipeline_mode<synchronous>, transform_indices = @transform_2, window_bounds = array<i64: 1, 128>}, {transform_indices = @transform_3, window_bounds = array<i64: 1, 1, 8, 128>}]} {
    %c0 = arith.constant 0 : index
    %c0_0 = arith.constant 0 : index
    %c0_1 = arith.constant 0 : index
    %0 = vector.load %arg2[%c0, %c0_0, %c0_1] : memref<1x8x512xf32, #tpu.memory_space<vmem>>, vector<1x8x512xf32>
    %1 = vector.shape_cast %0 : vector<1x8x512xf32> to vector<8x512xf32>
    %c0_2 = arith.constant 0 : index
    %c0_3 = arith.constant 0 : index
    %2 = vector.load %arg3[%c0_2, %c0_3] : memref<512x128xf32, #tpu.memory_space<vmem>>, vector<512x128xf32>
    %cst = arith.constant dense<0.000000e+00> : vector<8x128xf32>
    %3 = tpu.matmul %1, %2, %cst {dimension_numbers = #tpu.dot_dimension_numbers<[1], [0], [0], [1], [0, 0, 1, 1], [], []>} : vector<8x512xf32>, vector<512x128xf32>, vector<8x128xf32> -> vector<8x128xf32>
    %4 = arith.mulf %3, %3 : vector<8x128xf32>
    %cst_4 = arith.constant dense<0.000000e+00> : vector<8xf32>
    %5 = vector.multi_reduction <add>, %4, %cst_4 [1] : vector<8x128xf32> to vector<8xf32>
    %6 = vector.shape_cast %5 : vector<8xf32> to vector<8x1xf32>
    %cst_5 = arith.constant 1.280000e+02 : f32
    %7 = vector.broadcast %cst_5 : f32 to vector<8x1xf32>
    %8 = arith.divf %6, %7 : vector<8x1xf32>
    %cst_6 = arith.constant 9.99999974E-6 : f32
    %9 = vector.broadcast %cst_6 : f32 to vector<8x1xf32>
    %10 = arith.addf %8, %9 : vector<8x1xf32>
    %11 = math.rsqrt %10 : vector<8x1xf32>
    %12 = vector.broadcast %11 : vector<8x1xf32> to vector<8x128xf32>
    %13 = arith.mulf %3, %12 : vector<8x128xf32>
    %c0_7 = arith.constant 0 : index
    %c0_8 = arith.constant 0 : index
    %14 = vector.load %arg4[%c0_7, %c0_8] : memref<1x128xf32, #tpu.memory_space<vmem>>, vector<1x128xf32>
    %15 = vector.broadcast %14 : vector<1x128xf32> to vector<8x128xf32>
    %16 = arith.mulf %15, %13 : vector<8x128xf32>
    %c0_9 = arith.constant 0 : index
    %c0_10 = arith.constant 0 : index
    %c0_11 = arith.constant 0 : index
    %c0_12 = arith.constant 0 : index
    %17 = vector.load %arg5[%c0_9, %c0_10, %c0_11, %c0_12] : memref<1x1x8x128xf32, #tpu.memory_space<vmem>>, vector<1x1x8x128xf32>
    %18 = vector.shape_cast %17 : vector<1x1x8x128xf32> to vector<8x128xf32>
    %19 = vector.shape_cast %16 : vector<8x128xf32> to vector<1x1x8x128xf32>
    tpu.vector_store %arg5[%c0_9, %c0_10, %c0_11, %c0_12], %19 {strides = array<i32>} : memref<1x1x8x128xf32, #tpu.memory_space<vmem>>, vector<1x1x8x128xf32>,
    return
  }
  func.func @transform_0(%arg0: i32, %arg1: i32) -> (i32, i32, i32) {
    %c0_i32 = arith.constant 0 : i32
    %c0_i32_0 = arith.constant 0 : i32
    %c0_i32_1 = arith.constant 0 : i32
    return %arg0, %c0_i32, %c0_i32_0 : i32, i32, i32
  }
  func.func @transform_1(%arg0: i32, %arg1: i32) -> (i32, i32) {
    %c0_i32 = arith.constant 0 : i32
    %c0_i32_0 = arith.constant 0 : i32
    return %c0_i32, %arg1 : i32, i32
  }
  func.func @transform_2(%arg0: i32, %arg1: i32) -> (i32, i32) {
    %c0_i32 = arith.constant 0 : i32
    %c0_i32_0 = arith.constant 0 : i32
    %c0_i32_1 = arith.constant 0 : i32
    return %c0_i32, %c0_i32_0 : i32, i32
  }
  func.func @transform_3(%arg0: i32, %arg1: i32) -> (i32, i32, i32, i32) {
    %c0_i32 = arith.constant 0 : i32
    %c0_i32_0 = arith.constant 0 : i32
    %c0_i32_1 = arith.constant 0 : i32
    return %arg0, %arg1, %c0_i32, %c0_i32_0 : i32, i32, i32, i32
  }
}

</mosaic_0001>

<bundles_post_ra>
// kernel: tpu_custom_call.1
= control target key start
LH: loop header
LB: loop body
LE: loop exit
PB: predicated region body
PF: predicated region fallthrough
CT: control target
= control target key end

     0   :  { %s1526_s0 = inlined_call_operand.hbm [shape: f32[2,8,512], index: 0, kind: input, shape index: {}]   ;;  %s1527_s1 = inlined_call_operand.hbm [shape: f32[512,512], index: 1, kind: input, shape index: {}]   ;;  %s1528_s2 = inlined_call_operand.vmem [shape: f32[1,128], index: 2, kind: input, shape index: {}]   ;;  %s1529_s3 = inlined_call_operand.hbm [shape: f32[2,4,8,128], index: 3, kind: output, shape index: {}]  }
   0x1   :  { %1538 = sst [smem:[#allocation18_spill]] %s1526_s0 }
   0x2   :  { %8 = vsyncpa [#allocation3], 0 }
   0x3   :  { %10 = vsyncpa [#allocation3 + $0x1], 0 }
   0x4   :  { %11 = vsyncpa [#allocation6], 0 }
   0x5   :  { %13 = vsyncpa [#allocation6 + $0x1], 0 }
   0x6   :  { %14 = vsyncpa [#allocation4], 0 }
   0x7   :  { %16 = vsyncpa [#allocation4 + $0x1], 0  ;;  %s1115_s12 = smov 0   ;;  %s1117_s13 = smov 0  }
   0x8   :  { %s1119_s14 = smov 0   ;;  %s1121_s15 = smov 0  }
   0x9   :  { %s1123_s16 = smov 0   ;;  %s1125_s17 = smov 0  }
   0xa   :  { %s1127_s18 = smov 0   ;;  %s1129_s19 = smov 0  }
   0xb   :  { %s1131_s20 = smov 0   ;;  %s1133_s21 = smov 0  }
   0xc   :  { %s1135_s22 = smov 0   ;;  %s1137_s23 = smov 0  }
   0xd   :  { %s1139_s24 = smov 0   ;;  %s1141_s25 = smov 0  }
   0xe LB: > { %1539 = sst [smem:[#allocation11_spill]] %s1079_s23  ;;  %s1530_s26 = sadd.s32 4294967295, %s1087_s25   ;;  %s1087_s25 = sphi %s1141_s25, %s22_s25   ;;  %s1083_s24 = sphi %s1139_s24, %s1572_s24   ;;  %s1079_s23 = sphi %s1137_s23, %s1571_s23   ;;  %s1075_s22 = sphi %s1135_s22, %s1570_s22   ;;  %s1071_s21 = sphi %s1133_s21, %s1569_s21   ;;  %s1067_s20 = sphi %s1131_s20, %s1581_s20   ;;  %s1063_s19 = sphi %s1129_s19, %s1580_s19   ;;  %s1059_s18 = sphi %s1127_s18, %s1579_s18   ;;  %s1055_s17 = sphi %s1125_s17, %s1578_s17   ;;  %s1051_s16 = sphi %s1123_s16, %s1577_s16   ;;  %s1047_s15 = sphi %s1121_s15, %s1576_s15   ;;  %s1043_s14 = sphi %s1119_s14, %s1575_s14   ;;  %s1039_s13 = sphi %s1117_s13, %s1574_s13   ;;  %s1035_s12 = sphi %s1115_s12, %s1573_s12  }
   0xf   : > { %1540 = sst [smem:[#allocation12_spill]] %s1083_s24  ;;  %s31_s28 = sadd.s32 1, %s1079_s23 }
  0x10   : > { %s34_s29 = sadd.s32 1, %s1083_s24  ;;  %p32_p0 = scmp.ge.s32.totalorder %s31_s28, 4 }
  0x11   : > { %s41_s30 = sadd.s32 1, %s1067_s20  ;;  %p48_p1 = scmp.ne.s32.totalorder %s1067_s20, %s1063_s19 }
  0x12   : > { %p49_p2 = scmp.eq.s32.totalorder %s1087_s25, 0  ;;  %s1583_s28 = smov (%p32_p0, %s31_s28), 0 }
  0x13   : > { %1541 = sst [smem:[#allocation13_spill]] %s1583_s28  ;;  %s1585_s29 = smov (!%p32_p0, %s34_s29), %s1083_s24 }
  0x14   : > { %p1196_p3 = por %p49_p2, %p48_p1  ;;  %p54_p4 = scmp.ne.s32.totalorder %s1063_s19, %s1059_s18 }
  0x15   : > { %p36_p5 = scmp.ge.s32.totalorder %s1585_s29, 2  ;;  %p1203_p6 = scmp.eq.s32.totalorder %s1530_s26, 0 }
  0x16   : > { %s64_s6 = ssub.s32 %s1079_s23, %s1583_s28  ;;  %s67_s7 = sadd.s32 1, %s1055_s17 }
  0x17   : > { %s1587_s29 = smov (%p36_p5, %s1585_s29), 0  ;;  %p1214_p7 = por %p1203_p6, %p54_p4 }
  0x18   : > { %1544 = sst [smem:[#allocation14_spill]] %s1587_s29  ;;  %p65_p8 = scmp.eq.s32.totalorder %s64_s6, 0 }
  0x19   : > { %s1545_s8 = scalar_select %p1214_p7, 1, 0 }
  0x1a   : > { %s38_s9 = ssub.s32 %s1083_s24, %s1587_s29  ;;  %p74_p9 = scmp.ne.s32.totalorder %s1055_s17, %s1051_s16 }
  0x1b   : > { %p39_p10 = scmp.eq.s32.totalorder %s38_s9, 0  ;;  %p80_p11 = scmp.ne.s32.totalorder %s1051_s16, %s1047_s15 }
  0x1c   : > { %s1225_s10 = scalar_select %p65_p8, %s1055_s17, %s67_s7  }
  0x1d   : > { %s1228_s11 = scalar_select %p39_p10, %s1067_s20, %s41_s30  }
  0x1e   : > { %1546 = sst [smem:[#allocation15_spill]] %s1225_s10  ;;  %p1232_p12 = por %p74_p9, %p49_p2 }
  0x1f   : > { %1547 = sst [smem:[#allocation16_spill]] %s1228_s11  ;;  %p1238_p13 = por %p80_p11, %p1203_p6 }
  0x20   : > { %s113_s26 = sor.u32 %s64_s6, %s38_s9  ;;  %s116_s29 = sadd.s32 1, %s1043_s14 }
  0x21   : > { %s1549_s27 = scalar_select %p1238_p13, 1, 0 }
  0x22   : > { %p114_p0 = scmp.eq.s32.totalorder %s113_s26, 0  ;;  %p126_p1 = scmp.ne.s32.totalorder %s1043_s14, %s1039_s13 }
  0x23   : > { %s1550_s15 = sadd.s32 4294967295, %s1087_s25   ;;  %p132_p5 = scmp.ne.s32.totalorder %s1039_s13, %s1035_s12 }
  0x24   : > { %p127_p4 = scmp.eq.s32.totalorder %s1550_s15, 7  ;;  %s1553_s5 = sadd.s32 4294967294, %s1087_s25  }
  0x25   : > { %s1250_s30 = scalar_select %p114_p0, %s1043_s14, %s116_s29  }
  0x26   : > { %p1252_p2 = por %p127_p4, %p126_p1  ;;  %p133_p6 = scmp.eq.s32.totalorder %s1553_s5, 7 }
  0x27   : > { %1551 = sst [smem:[#allocation17_spill]] %s1250_s30  ;;  %p758_p8 = scmp.lt.s32.totalorder %s1087_s25, 8 }
  0x28   : > { %s1552_s7 = scalar_select %p1252_p2, 1, 0 }
  0x29   : > { %p1259_p9 = por %p133_p6, %p132_p5  ;;  %s156_s26 = sand.u32 1, %s1067_s20  }
  0x2a   : > { %s591_s9 = sshll.u32 %s156_s26, 5  ;;  %s606_s28 = sshll.u32 %s1083_s24, 9 }
  0x2b   : > { %s1554_s6 = scalar_select %p1259_p9, 1, 0 }
  0x2c   : > { %s1555_s0 = sld [smem:[#allocation18_spill]]  ;;  %s160_s29 = scalar_lea.vmem [#allocation2], %s591_s9 }
  0x2d   : > { %s168_s30 = sshll.u32 %s160_s29, 4  ;;  %p1274_p10 = pnand %p758_p8, %p1196_p3  ;;  %s1270_s30 = int_to_ptr.vmem [resolvable:$true] %s168_s30 }
  0x2e   : > { %p1280_p11 = pnand %p758_p8, %p1232_p12 }
  0x2f   : > { %p879_p5 = pneg %p1274_p10 }
  0x32   : > { %s1268_s10 = scalar_lea.hbm %s1555_s0, %s606_s28  ;;  %s157_s28 = scalar_lea.sflag [#allocation3], %s156_s26 }
  0x33   : > { %s877_s9 = scalar_lea.hbm %s1268_s10, 512  ;;  %s882_s18 = scalar_lea.hbm %s1555_s0, 1024 }
  0x34   : > { %p878_p4 = scmp.ne.s32.totalorder %s1268_s10, %s877_s9  ;;  %p883_p12 = scmp.lt.u32.totalorder %s1268_s10, %s1555_s0 }
  0x35   : > { %p884_p8 = scmp.lt.u32.totalorder %s882_s18, %s877_s9  ;;  %p886_p1 = scmp.lt.u32.totalorder %s877_s9, %s1268_s10 }
  0x36   : > { %p880_p3 = pnand %p879_p5, %p878_p4 }
  0x37   : > { %p885_p0 = por %p884_p8, %p883_p12 }
  0x38   : > { %p881_p6 = pneg %p880_p3 }
  0x39   : > { %p887_p9 = por %p886_p1, %p885_p0 }
  0x3b   : > { %p888_p2 = pnand %p887_p9, %p881_p6 }
  0x3d   : > { %891 = shalt.err (!%p888_p2)
}
  0x3e   : > { %s892_s26 = scalar_lea.vmem %s1270_s30, 512  ;;  %s1089_s4 = smov [#allocation2]  }
  0x3f   : > { %p893_p4 = scmp.ne.s32.totalorder %s1270_s30, %s892_s26  ;;  %s897_s15 = sshll.u32 %s1089_s4, 4  ;;  %s898_s15 = int_to_ptr.vmem [resolvable:$false] %s897_s15 }
  0x40   : > { %s899_s24 = scalar_lea.vmem %s898_s15, 1024  ;;  %p900_p7 = scmp.lt.s32.totalorder %s1270_s30, %s898_s15 }
  0x41   : > { %p895_p3 = pnand %p893_p4, %p879_p5  ;;  %p901_p12 = scmp.lt.s32.totalorder %s899_s24, %s892_s26 }
  0x43   : > { %p896_p13 = pneg %p895_p3  ;;  %p902_p8 = por %p901_p12, %p900_p7 }
  0x45   : > { %p903_p0 = pnand %p902_p8, %p896_p13 }
  0x47   : > { %906 = shalt.err (!%p903_p0)
}
  0x48   : > { %750 = dma.hbm_to_vmem [thread:$0]  (!%p1274_p10), %s1268_s10, 512, %s1270_s30, %s157_s28  }
  0x49   : > { %p1558_p2 = scmp.lt.s32.totalorder %s1087_s25, 9  ;;  %p1559_p9 = scmp.ge.s32.totalorder %s1087_s25, 1 }
  0x4a   : > { %s175_s18 = sand.u32 1, %s1055_s17   ;;  %s595_s29 = sshll.u32 %s1079_s23, 7 }
  0x4b   : > { %p1315_p1 = pnand %p1559_p9, %p1558_p2  ;;  %s594_s26 = sshll.u32 %s175_s18, 9 }
  0x4c   : > { %s1324_s15 = scalar_lea.hbm %s1527_s1, %s595_s29  ;;  %s179_s24 = scalar_lea.vmem [#allocation5], %s594_s26 }
  0x4d   : > { %s185_s10 = sshll.u32 %s179_s24, 4  ;;  %s1328_s30 = scalar_lea.sflag [#allocation6], %s175_s18  ;;  %s1326_s10 = int_to_ptr.vmem [resolvable:$true] %s185_s10 }
  0x4e   : > { %s907_s28 = scalar_lea.hbm %s1324_s15, 8192  ;;  %p909_p13 = pneg %p1280_p11 }
  0x4f   : > { %p908_p7 = scmp.ne.s32.totalorder %s1324_s15, %s907_s28  ;;  %s912_s5 = scalar_lea.hbm %s1527_s1, 32768 }
  0x50   : > { %p913_p6 = scmp.lt.u32.totalorder %s1324_s15, %s1527_s1  ;;  %p914_p4 = scmp.lt.u32.totalorder %s912_s5, %s907_s28 }
  0x51   : > { %p910_p10 = pnand %p909_p13, %p908_p7  ;;  %p916_p12 = scmp.lt.u32.totalorder %s907_s28, %s1324_s15 }
  0x52   : > { %p915_p3 = por %p914_p4, %p913_p6 }
  0x53   : > { %p911_p5 = pneg %p910_p10 }
  0x54   : > { %p917_p8 = por %p916_p12, %p915_p3 }
  0x56   : > { %p918_p0 = pnand %p917_p8, %p911_p5 }
  0x58   : > { %921 = shalt.err (!%p918_p0)
}
  0x59   : > { %s922_s18 = scalar_lea.vmem %s1326_s10, 8192  ;;  %s1090_s26 = smov [#allocation5]  }
  0x5a   : > { %p923_p2 = scmp.ne.s32.totalorder %s1326_s10, %s922_s18  ;;  %s927_s24 = sshll.u32 %s1090_s26, 4  ;;  %s928_s24 = int_to_ptr.vmem [resolvable:$false] %s927_s24 }
  0x5b   : > { %s929_s0 = scalar_lea.vmem %s928_s24, 16384  ;;  %p930_p10 = scmp.lt.s32.totalorder %s1326_s10, %s928_s24 }
  0x5c   : > { %p925_p9 = pnand %p923_p2, %p909_p13  ;;  %p931_p6 = scmp.lt.s32.totalorder %s929_s0, %s922_s18 }
  0x5e   : > { %p926_p7 = pneg %p925_p9  ;;  %p932_p4 = por %p931_p6, %p930_p10 }
  0x60   : > { %p933_p3 = pnand %p932_p4, %p926_p7 }
  0x62   : > { %936 = shalt.err (!%p933_p3)
}
  0x63   : > { %s1091_s23 = smov 512   ;;  %s1092_s28 = smov 128  }
  0x64   : > { %s1093_s29 = smov 8   ;;  %197 = sbr.rel (%p1315_p1) target bundleno = 543 (0x21f), region = 32 }
  0x65   : > { %753 = dma.hbm_to_vmem [thread:$0]  (!%p1280_p11), %s1324_s15, 8192, %s1326_s10, %s1328_s30, %s1091_s23, %s1092_s28, %s1093_s29  }
  0x66   : > { %s199_s4 = sand.u32 (!%p1315_p1), 1, %s1063_s19   ;;  %p1561_p13 = scmp.ne.s32.totalorder (!%p1315_p1), %s1545_s8, 0 }
  0x67   : > { %s597_s5 = sshll.u32 (!%p1315_p1), %s199_s4, 5  ;;  %s200_s18 = scalar_lea.sflag (!%p1315_p1), [#allocation3], %s199_s4 }
  0x68   : > { %s1359_s26 = scalar_lea.vmem (!%p1315_p1), [#allocation2], %s597_s5 }
  0x6b   : > { %1022 = dma.done.wait (%p1561_p13), %s200_s18, 512  }
  0x6c   : > { %1024 = vsyncadd (%p1561_p13), %s200_s18, 4294966784  ;;  %s208_s24 = sand.u32 1, %s1051_s16   ;;  %p1562_p11 = scmp.ne.s32.totalorder %s1549_s27, 0 }
  0x6d   : > { %s598_s11 = sshll.u32 %s208_s24, 9  ;;  %s209_s15 = scalar_lea.sflag [#allocation6], %s208_s24 }
  0x6e   : > { %s1366_s10 = scalar_lea.vmem [#allocation5], %s598_s11 }
  0x6f   : > { %1026 = dma.done.wait (%p1562_p11), %s209_s15, 8192  }
  0x70   : > { %1028 = vsyncadd (%p1562_p11), %s209_s15, 4294959104  ;;  %v260_v0 = vld [vmem:[%s1366_s10 + $0x80] sm:$0xff]  ;;  %v261_v1 = vld [vmem:[%s1366_s10 + $0x88] sm:$0xff]  ;;  %s237_s27 = sand.u32 1, %s1039_s13   ;;  %s602_s9 = sshll.u32 %s1075_s22, 2 }
  0x71   : > { %v292_v2 = vld [vmem:[%s1366_s10 + $0x180] sm:$0xff]  ;;  %v677_v3 = vpack.c.bf16 %v261_v1, %v260_v0  ;;  %v293_v4 = vld [vmem:[%s1366_s10 + $0x188] sm:$0xff]  ;;  %v262_v11 = vld [vmem:[%s1366_s10 + $0x90] sm:$0xff]  ;;  %s599_s8 = sshll.u32 %s237_s27, 3  ;;  %s477_s30 = sadd.s32 %s1071_s21, %s602_s9 }
  0x72   : > { %v244_v5 = vld [vmem:[%s1366_s10] sm:$0xff]  ;;  %v245_v6 = vld [vmem:[%s1366_s10 + $0x8] sm:$0xff]  ;;  %v709_v7 = vpack.c.bf16 %v293_v4, %v292_v2  ;;  %v263_v13 = vld [vmem:[%s1366_s10 + $0x98] sm:$0xff]  ;;  %s603_s28 = sshll.u32 %s477_s30, 7  ;;  %s239_s29 = scalar_lea.vmem [#allocation7], %s599_s8 }
  0x73   : > { %v679_v8 = vpack.c.bf16 %v245_v6, %v244_v5  ;;  %v276_v9 = vld [vmem:[%s1366_s10 + $0x100] sm:$0xff]  ;;  %v277_v10 = vld [vmem:[%s1366_s10 + $0x108] sm:$0xff]  ;;  %678 = vmatprep.subr.bf16.mxu0 %v677_v3  ;;  %v294_v14 = vld [vmem:[%s1366_s10 + $0x190] sm:$0xff]  ;;  %v681_v16 = vpack.c.bf16 %v263_v13, %v262_v11  ;;  %s481_s4 = sshll.u32 %s239_s29, 4  ;;  %s466_s21 = scalar_lea.sflag [#allocation4], %s237_s27  ;;  %s1451_s4 = int_to_ptr.vmem [resolvable:$true] %s481_s4 }
  0x74   : > { %v711_v12 = vpack.c.bf16 %v277_v10, %v276_v9  ;;  %v295_v15 = vld [vmem:[%s1366_s10 + $0x198] sm:$0xff]  ;;  %710 = vmatprep.subr.bf16.mxu1 %v709_v7  ;;  %v246_v18 = vld [vmem:[%s1366_s10 + $0x10] sm:$0xff]  ;;  %v264_v23 = vld [vmem:[%s1366_s10 + $0xa0] sm:$0xff]  ;;  %s937_s22 = scalar_lea.vmem %s1451_s4, 128  ;;  %p1563_p5 = scmp.ne.s32.totalorder %s1552_s7, 0 }
  0x75   : > { %680 = vmatpush3.bf16.msra.mxu0 %v679_v8  ;;  %v713_v17 = vpack.c.bf16 %v295_v15, %v294_v14  ;;  %v247_v19 = vld [vmem:[%s1366_s10 + $0x18] sm:$0xff]  ;;  %v278_v20 = vld [vmem:[%s1366_s10 + $0x110] sm:$0xff]  ;;  %v265_v24 = vld [vmem:[%s1366_s10 + $0xa8] sm:$0xff]  ;;  %p938_p1 = scmp.ne.s32.totalorder %s1451_s4, %s937_s22  ;;  %s1094_s24 = smov [#allocation7]  }
  0x76   : > { %712 = vmatpush3.bf16.msra.mxu1 %v711_v12  ;;  %v683_v21 = vpack.c.bf16 %v247_v19, %v246_v18  ;;  %v279_v22 = vld [vmem:[%s1366_s10 + $0x118] sm:$0xff]  ;;  %682 = vmatprep.subr.bf16.mxu0 %v681_v16  ;;  %v685_v26 = vpack.c.bf16 %v265_v24, %v264_v23  ;;  %v296_v27 = vld [vmem:[%s1366_s10 + $0x1a0] sm:$0xff]  ;;  %v297_v28 = vld [vmem:[%s1366_s10 + $0x1a8] sm:$0xff]  ;;  %s941_s11 = sshll.u32 %s1094_s24, 4  ;;  %s942_s11 = int_to_ptr.vmem [resolvable:$false] %s941_s11 }
  0x77   : > { %714 = vmatprep.subr.bf16.mxu1 %v713_v17  ;;  %v715_v25 = vpack.c.bf16 %v279_v22, %v278_v20  ;;  %v248_v29 = vld [vmem:[%s1366_s10 + $0x20] sm:$0xff]  ;;  %v717_v30 = vpack.c.bf16 %v297_v28, %v296_v27  ;;  %v249_v31 = vld [vmem:[%s1366_s10 + $0x28] sm:$0xff]  ;;  %v266_v35 = vld [vmem:[%s1366_s10 + $0xb0] sm:$0xff]  ;;  %p939_p12 = pnand %p938_p1, %p1563_p5  ;;  %s943_s15 = scalar_lea.vmem %s942_s11, 256 }
  0x78   : > { %v280_v32 = vld [vmem:[%s1366_s10 + $0x120] sm:$0xff]  ;;  %v281_v33 = vld [vmem:[%s1366_s10 + $0x128] sm:$0xff]  ;;  %v687_v34 = vpack.c.bf16 %v249_v31, %v248_v29  ;;  %v267_v36 = vld [vmem:[%s1366_s10 + $0xb8] sm:$0xff]  ;;  %p944_p0 = scmp.lt.s32.totalorder %s1451_s4, %s942_s11  ;;  %p945_p2 = scmp.lt.s32.totalorder %s943_s15, %s937_s22 }
  0x79   : > { %684 = vmatpush3.bf16.msra.mxu0 %v683_v21  ;;  %v298_v37 = vld [vmem:[%s1366_s10 + $0x1b0] sm:$0xff]  ;;  %v719_v38 = vpack.c.bf16 %v281_v33, %v280_v32  ;;  %v689_v39 = vpack.c.bf16 %v267_v36, %v266_v35  ;;  %v299_v40 = vld [vmem:[%s1366_s10 + $0x1b8] sm:$0xff]  ;;  %v268_v46 = vld [vmem:[%s1366_s10 + $0xc0] sm:$0xff]  ;;  %p940_p8 = pneg %p939_p12 }
  0x7a   : > { %716 = vmatpush3.bf16.msra.mxu1 %v715_v25  ;;  %686 = vmatprep.subr.bf16.mxu0 %v685_v26  ;;  %v250_v41 = vld [vmem:[%s1366_s10 + $0x30] sm:$0xff]  ;;  %v251_v42 = vld [vmem:[%s1366_s10 + $0x38] sm:$0xff]  ;;  %v721_v43 = vpack.c.bf16 %v299_v40, %v298_v37  ;;  %v269_v47 = vld [vmem:[%s1366_s10 + $0xc8] sm:$0xff]  ;;  %p946_p9 = por %p945_p2, %p944_p0 }
  0x7b   : > { %718 = vmatprep.subr.bf16.mxu1 %v717_v30  ;;  %v282_v44 = vld [vmem:[%s1366_s10 + $0x130] sm:$0xff]  ;;  %v283_v45 = vld [vmem:[%s1366_s10 + $0x138] sm:$0xff]  ;;  %v300_v48 = vld [vmem:[%s1366_s10 + $0x1c0] sm:$0xff]  ;;  %v691_v50 = vpack.c.bf16 %v251_v42, %v250_v41  ;;  %v693_v52 = vpack.c.bf16 %v269_v47, %v268_v46 }
  0x7c   : > { %v301_v49 = vld [vmem:[%s1366_s10 + $0x1c8] sm:$0xff]  ;;  %v723_v51 = vpack.c.bf16 %v283_v45, %v282_v44  ;;  %v252_v53 = vld [vmem:[%s1366_s10 + $0x40] sm:$0xff]  ;;  %v270_v58 = vld [vmem:[%s1366_s10 + $0xd0] sm:$0xff]  ;;  %p947_p7 = pnand %p946_p9, %p940_p8 }
  0x7d   : > { %688 = vmatpush3.bf16.msra.mxu0 %v687_v34  ;;  %v253_v54 = vld [vmem:[%s1366_s10 + $0x48] sm:$0xff]  ;;  %v284_v55 = vld [vmem:[%s1366_s10 + $0x140] sm:$0xff]  ;;  %v725_v56 = vpack.c.bf16 %v301_v49, %v300_v48  ;;  %v271_v59 = vld [vmem:[%s1366_s10 + $0xd8] sm:$0xff] }
  0x7e   : > { %720 = vmatpush3.bf16.msra.mxu1 %v719_v38  ;;  %690 = vmatprep.subr.bf16.mxu0 %v689_v39  ;;  %v285_v57 = vld [vmem:[%s1366_s10 + $0x148] sm:$0xff]  ;;  %v302_v60 = vld [vmem:[%s1366_s10 + $0x1d0] sm:$0xff]  ;;  %v303_v61 = vld [vmem:[%s1366_s10 + $0x1d8] sm:$0xff]  ;;  %v695_v62 = vpack.c.bf16 %v253_v54, %v252_v53  ;;  %v697_v0 = vpack.c.bf16 %v271_v59, %v270_v58 }
  0x7f   : > { %722 = vmatprep.subr.bf16.mxu1 %v721_v43  ;;  %v727_v63 = vpack.c.bf16 %v285_v57, %v284_v55  ;;  %v254_v1 = vld [vmem:[%s1366_s10 + $0x50] sm:$0xff]  ;;  %v255_v2 = vld [vmem:[%s1366_s10 + $0x58] sm:$0xff]  ;;  %v729_v4 = vpack.c.bf16 %v303_v61, %v302_v60  ;;  %v272_v6 = vld [vmem:[%s1366_s10 + $0xe0] sm:$0xff] }
  0x80   : > { %v286_v3 = vld [vmem:[%s1366_s10 + $0x150] sm:$0xff]  ;;  %v287_v5 = vld [vmem:[%s1366_s10 + $0x158] sm:$0xff]  ;;  %v273_v7 = vld [vmem:[%s1366_s10 + $0xe8] sm:$0xff]  ;;  %v699_v10 = vpack.c.bf16 %v255_v2, %v254_v1 }
  0x81   : > { %692 = vmatpush3.bf16.msra.mxu0 %v691_v50  ;;  %v304_v8 = vld [vmem:[%s1366_s10 + $0x1e0] sm:$0xff]  ;;  %v305_v9 = vld [vmem:[%s1366_s10 + $0x1e8] sm:$0xff]  ;;  %v731_v13 = vpack.c.bf16 %v287_v5, %v286_v3  ;;  %v701_v14 = vpack.c.bf16 %v273_v7, %v272_v6  ;;  %v243_v17 = vld [vmem:[%s1359_s26 + $0x18] sm:$0xff] }
  0x82   : > { %724 = vmatpush3.bf16.msra.mxu1 %v723_v51  ;;  %694 = vmatprep.subr.bf16.mxu0 %v693_v52  ;;  %v256_v11 = vld [vmem:[%s1366_s10 + $0x60] sm:$0xff]  ;;  %v257_v12 = vld [vmem:[%s1366_s10 + $0x68] sm:$0xff]  ;;  %v733_v18 = vpack.c.bf16 %v305_v9, %v304_v8  ;;  %v274_v20 = vld [vmem:[%s1366_s10 + $0xf0] sm:$0xff] }
  0x83   : > { %726 = vmatprep.subr.bf16.mxu1 %v725_v56  ;;  %v288_v15 = vld [vmem:[%s1366_s10 + $0x160] sm:$0xff]  ;;  %v241_v16 = vld [vmem:[%s1359_s26 + $0x8] sm:$0xff]  ;;  %v275_v21 = vld [vmem:[%s1366_s10 + $0xf8] sm:$0xff]  ;;  %442 = vmatprep.mubr.f32.mxu1 %v243_v17  ;;  %v703_v24 = vpack.c.bf16 %v257_v12, %v256_v11 }
  0x84   : > { %v289_v19 = vld [vmem:[%s1366_s10 + $0x168] sm:$0xff]  ;;  %372 = vmatprep.mubr.f32.mxu0 %v241_v16  ;;  %v306_v22 = vld [vmem:[%s1366_s10 + $0x1f0] sm:$0xff]  ;;  %v307_v23 = vld [vmem:[%s1366_s10 + $0x1f8] sm:$0xff]  ;;  %v705_v26 = vpack.c.bf16 %v275_v21, %v274_v20 }
  0x85   : > { %696 = vmatpush3.bf16.msra.mxu0 %v695_v62  ;;  %v735_v25 = vpack.c.bf16 %v289_v19, %v288_v15  ;;  %v258_v27 = vld [vmem:[%s1366_s10 + $0x70] sm:$0xff]  ;;  %v259_v28 = vld [vmem:[%s1366_s10 + $0x78] sm:$0xff]  ;;  %v737_v29 = vpack.c.bf16 %v307_v23, %v306_v22  ;;  %v240_v34 = vld [vmem:[%s1359_s26] sm:$0xff] }
  0x86   : > { %728 = vmatpush3.bf16.msra.mxu1 %v727_v63  ;;  %698 = vmatprep.subr.bf16.mxu0 %v697_v0  ;;  %v290_v30 = vld [vmem:[%s1366_s10 + $0x170] sm:$0xff]  ;;  %v291_v31 = vld [vmem:[%s1366_s10 + $0x178] sm:$0xff]  ;;  %v707_v32 = vpack.c.bf16 %v259_v28, %v258_v27  ;;  %v600_v48 = vld [vmem:[%s1528_s2] ss:$0 sm:$0xff] }
  0x87   : > { %730 = vmatprep.subr.bf16.mxu1 %v729_v4  ;;  %v739_v33 = vpack.c.bf16 %v291_v31, %v290_v30  ;;  %v242_v35 = vld [vmem:[%s1359_s26 + $0x10] sm:$0xff]  ;;  %s1449_s26 = scalar_lea.hbm %s1529_s3, %s603_s28 }
  0x89   : > { %700 = vmatpush3.bf16.msra.mxu0 %v699_v10 }
  0x8a   : > { %732 = vmatpush3.bf16.msra.mxu1 %v731_v13  ;;  %702 = vmatprep.subr.bf16.mxu0 %v701_v14 }
  0x8b   : > { %734 = vmatprep.subr.bf16.mxu1 %v733_v18 }
  0x8d   : > { %704 = vmatpush3.bf16.msra.mxu0 %v703_v24 }
  0x8e   : > { %736 = vmatpush3.bf16.msra.mxu1 %v735_v25  ;;  %706 = vmatprep.subr.bf16.mxu0 %v705_v26 }
  0x8f   : > { %738 = vmatprep.subr.bf16.mxu1 %v737_v29 }
  0x91   : > { %708 = vmatpush3.bf16.msra.mxu0 %v707_v32 }
  0x92   : > { %740 = vmatpush3.bf16.msra.mxu1 %v739_v33 }
  0x94   : > { %373 = vmatmul.mubr.f32.vlgmr.msra.gmra.mrb[0].mxu0 %v240_v34 }
  0x95   : > { %443 = vmatmul.mubr.f32.vlgmr.msra.gmra.mrb[0].mxu1 %v242_v35 }
 0x167   : > { %v639_v36 = vpop.f32.mrb[0].mxu0 }
 0x168   : > { %v674_v37 = vpop.f32.mrb[0].mxu1  ;;  %v640_v38 = vpop.f32.mrb[1].mxu0 }
 0x169   : > { %v641_v39 = vadd.f32 %v640_v38, %v639_v36  ;;  %v675_v40 = vpop.f32.mrb[1].mxu1 }
 0x16a   : > { %v676_v41 = vadd.f32 %v675_v40, %v674_v37 }
 0x16c   : > { %v445_v42 = vadd.f32 %v676_v41, %v641_v39 }
 0x16e   : > { %v448_v43 = vmul.f32 %v445_v42, %v445_v42 }
 0x170   : > { %449 = vadd.xlane.f32.xlu0 %v448_v43 }
 0x1fd   : > { %v450_v44 = vpop.xlane.xlu0 %449 }
 0x1fe   : > { %v452_v45 = vmul.f32 0.0078125, %v450_v44 }
 0x200   : > { %v453_v46 = vadd.f32 1e-05, %v452_v45 }
 0x202   : > { %875 = vrsqrt.f32 %v453_v46 }
 0x20c   : > { %v876_v47 = vpop.eup %875 }
 0x20d   : > { %v455_v49 = vmul.f32 %v876_v47, %v445_v42 }
 0x20f   : > { %v463_v50 = vmul.f32 %v600_v48, %v455_v49 }
 0x211   : > { %464 = vst [vmem:[%s239_s29] sm:$0xff] %v463_v50 }
 0x212   : > { %950 = shalt.err (!%p947_p7)
}
 0x213   : > { %s951_s10 = scalar_lea.hbm %s1449_s26, 128  ;;  %s955_s9 = scalar_lea.hbm %s1529_s3, 1024 }
 0x214   : > { %p952_p10 = scmp.ne.s32.totalorder %s1449_s26, %s951_s10  ;;  %p956_p3 = scmp.lt.u32.totalorder %s1449_s26, %s1529_s3 }
 0x215   : > { %p957_p13 = scmp.lt.u32.totalorder %s955_s9, %s951_s10  ;;  %p959_p1 = scmp.lt.u32.totalorder %s951_s10, %s1449_s26 }
 0x216   : > { %p953_p6 = pnand %p952_p10, %p1563_p5 }
 0x217   : > { %p958_p11 = por %p957_p13, %p956_p3 }
 0x218   : > { %p954_p4 = pneg %p953_p6 }
 0x219   : > { %p960_p12 = por %p959_p1, %p958_p11 }
 0x21b   : > { %p961_p8 = pnand %p960_p12, %p954_p4 }
 0x21d   : > { %964 = shalt.err (!%p961_p8)
}
 0x21e   : > { %745 = dma.vmem_to_hbm [thread:$0]  (%p1563_p5), %s1451_s4, 128, %s1449_s26, %s466_s21  }
 0x21f PF: > { %p759_p0 = scmp.ge.s32.totalorder %s1087_s25, 2  ;;  %s493_s23 = sand.u32 1, %s1035_s12  }
 0x220   : > { %p1564_p2 = scmp.ne.s32.totalorder %s1554_s6, 0  ;;  %s494_s28 = scalar_lea.sflag [#allocation4], %s493_s23 }
 0x222   : > { %p755_p9 = pnand %p759_p0, %p1564_p2 }
 0x224   : > { %1030 = dma.done.wait (!%p755_p9), %s494_s28, 128  }
 0x225   : > { %1032 = vsyncadd (!%p755_p9), %s494_s28, 4294967168  ;;  %s22_s25 = sadd.s32 1, %s1087_s25   ;;  %s1566_s7 = sld [smem:[#allocation17_spill]] }
 0x226   : > { %p1479_p7 = scmp.ge.s32.totalorder %s22_s25, 10   ;;  %s1567_s4 = sld [smem:[#allocation15_spill]] }
 0x227   : > { %s1568_s5 = sld [smem:[#allocation16_spill]]  ;;  %s1569_s21 = sld [smem:[#allocation11_spill]] }
 0x228   : > { %s1570_s22 = sld [smem:[#allocation12_spill]]  ;;  %s1571_s23 = sld [smem:[#allocation13_spill]] }
 0x229   : > { %s1572_s24 = sld [smem:[#allocation14_spill]]  ;;  %s1573_s12 = smov %s1039_s13 }
 0x22a   : > { %s1574_s13 = smov %s1043_s14  ;;  %s1576_s15 = smov %s1051_s16 }
 0x22b   : > { %s1575_s14 = smov %s1566_s7  ;;  %s1577_s16 = smov %s1055_s17 }
 0x22c   : > { %s1578_s17 = smov %s1567_s4  ;;  %s1579_s18 = smov %s1063_s19 }
 0x22d   : > { %s1580_s19 = smov %s1067_s20  ;;  %s1581_s20 = smov %s1568_s5 }
 0x22e   :  { %21 = sbr.rel (!%p1479_p7) target bundleno = 14 (0xe), region = 90 }
 0x235   :  { %499 = vsyncpa [#allocation3], 1 }
 0x236   :  { %501 = vsyncpa [#allocation3 + $0x1], 1 }
 0x237   :  { %502 = vsyncpa [#allocation6], 1 }
 0x238   :  { %504 = vsyncpa [#allocation6 + $0x1], 1 }
 0x239   :  { %505 = vsyncpa [#allocation4], 1 }
 0x23a   :  { %507 = vsyncpa [#allocation4 + $0x1], 1 }

</bundles_post_ra>
